<compile_context>
chip_gen: v5e
topology: v5e:2x2
jax: 0.10.0
libtpu: 0.0.40
codegen_flags: <defaults>
</compile_context>

<pallas_src>
import jax
import jax.numpy as jnp
from jax.experimental import pallas as pl
from jax.experimental.pallas import tpu as pltpu


# --------------------------------------------------------------------------
# Kernel
# --------------------------------------------------------------------------
def _att_kernel(g_ref, x_ref, wg_ref, wx_ref, bgx_ref, wpsi_ref, bpsi_ref,
                out_ref):
    """One (batch item, lane tile) of pixels, channel-major.

    g_ref:    (F_l,  TM)    x_ref:   (F_g, TM)
    wg_ref:   (F_int, F_l)  wx_ref:  (F_int, F_g)
    bgx_ref:  (F_int, 1)    == bg + bx, f32
    wpsi_ref: (F_int, 1)    f32
    bpsi_ref: (1,)          f32 scalar in SMEM
    out_ref:  (F_g, TM)
    """
    x = x_ref[...]

    # Two 1x1 convs (with folded BN) == channel matmuls; f32 accumulation.
    s = (jnp.dot(wg_ref[...], g_ref[...], preferred_element_type=jnp.float32)
         + jnp.dot(wx_ref[...], x, preferred_element_type=jnp.float32)
         + bgx_ref[...])
    p = jnp.maximum(s, 0.0)                                    # (F_int, TM)

    # psi 1x1 conv has a single output channel: VPU multiply + sublane
    # reduction instead of a near-empty MXU push.
    psi_logit = jnp.sum(p * wpsi_ref[...], axis=0, keepdims=True) + bpsi_ref[0]
    psi = jax.nn.sigmoid(psi_logit)                            # (1, TM), f32

    # Final gating in the output dtype; psi broadcasts over the F_g sublanes.
    out_ref[...] = (x * psi.astype(x.dtype)).astype(out_ref.dtype)


# --------------------------------------------------------------------------
# Host-side helpers
# --------------------------------------------------------------------------
def _fold_bn(w_conv, b_conv, gamma, beta, mean, var, eps):
    """Fold eval-mode BatchNorm2d into a 1x1 conv.

    w_conv: (C_out, C_in, 1, 1) PyTorch layout.  Returns W (C_out, C_in) and
    b (C_out,) such that  y = W @ x_channels + b  ==  BN(conv(x)).
    """
    scale = gamma / jnp.sqrt(var + eps)                 # (C_out,)
    w = w_conv[:, :, 0, 0] * scale[:, None]             # (C_out, C_in)
    b = (b_conv - mean) * scale + beta                  # (C_out,)
    return w, b


def _choose_tile_m(HW, row_bytes, target_bytes=8 * 1024 * 1024):
    """Pick the lane (pixel) tile.

    Prefers (a) the full H*W extent when it fits the pipelined-buffer budget
    (no padding, single tile per image), else (b) the largest multiple of 128
    that divides H*W and fits, else (c) the budget cap (wrapper pads lanes).
    """
    cap = max(128, (target_bytes // max(row_bytes, 1)) // 128 * 128)
    if HW <= cap:
        return HW                      # full extent: legal block, no padding
    best = 0
    t = 128
    while t <= cap:
        if HW % t == 0:
            best = t
        t += 128
    if best:
        return best
    return cap                         # ragged: wrapper pads the lane axis


def attention_block_pallas(g, x, params, *, eps=1e-5):
    """g: (N, F_l, H, W), x: (N, F_g, H, W)  ->  (N, F_g, H, W)."""
    N, F_l, H, W = g.shape
    _, F_g, _, _ = x.shape
    HW = H * W
    in_dtype = x.dtype

    # Fold BN into the 1x1 convs (eval mode).
    wg_m, bg_v = _fold_bn(params["wg"], params["bg"], params["g_gamma"],
                          params["g_beta"], params["g_mean"], params["g_var"],
                          eps)
    wx_m, bx_v = _fold_bn(params["wx"], params["bx"], params["x_gamma"],
                          params["x_beta"], params["x_mean"], params["x_var"],
                          eps)
    wp_m, bp_v = _fold_bn(params["wpsi"], params["bpsi"], params["p_gamma"],
                          params["p_beta"], params["p_mean"], params["p_var"],
                          eps)
    F_int = wg_m.shape[0]

    # Weights feed the MXU in the input dtype (bf16-native in deployments);
    # biases stay f32 (the accumulator dtype).
    wg_m = wg_m.astype(in_dtype)                         # (F_int, F_l)
    wx_m = wx_m.astype(in_dtype)                         # (F_int, F_g)
    bgx = (bg_v + bx_v).reshape(F_int, 1).astype(jnp.float32)
    wpsi_col = wp_m.reshape(1, F_int).T.astype(jnp.float32)   # (F_int, 1)
    bpsi = bp_v.reshape(1).astype(jnp.float32)                # (1,) SMEM scalar

    # Channel-major pixel layout: NCHW -> (N, C, H*W).  Pure reshape; no
    # transpose and no extra HBM pass.
    g3 = g.reshape(N, F_l, HW)
    x3 = x.reshape(N, F_g, HW)

    # Lane-tile sizing against a conservative VMEM budget (per-pixel bytes of
    # the double-buffered g/x/out blocks plus the f32 intermediates).
    dtype_bytes = jnp.dtype(in_dtype).itemsize
    row_bytes = 2 * (F_l + 2 * F_g) * dtype_bytes + 3 * F_int * 4
    tile_m = _choose_tile_m(HW, row_bytes)

    grid_m = pl.cdiv(HW, tile_m)
    HW_pad = grid_m * tile_m
    if HW_pad != HW:
        # Only hit when HW has no 128-aligned divisor AND exceeds the budget.
        g3 = jnp.pad(g3, ((0, 0), (0, 0), (0, HW_pad - HW)))
        x3 = jnp.pad(x3, ((0, 0), (0, 0), (0, HW_pad - HW)))

    # Explicit scoped-VMEM limit: pipelined tiles + (double-buffered) weights
    # + slack, clamped so it is safe even on v7x's 64 MiB physical VMEM.
    weight_bytes = F_int * (F_l + F_g) * dtype_bytes + 2 * F_int * 4
    vmem_limit = int(row_bytes * tile_m + 2 * weight_bytes + (8 << 20))
    vmem_limit = min(max(vmem_limit, 32 << 20), 48 << 20)

    grid = (N, grid_m)

    out3 = pl.pallas_call(
        _att_kernel,
        out_shape=jax.ShapeDtypeStruct((N, F_g, HW_pad), in_dtype),
        grid_spec=pltpu.PrefetchScalarGridSpec(
            num_scalar_prefetch=0,
            grid=grid,
            in_specs=[
                pl.BlockSpec((None, F_l, tile_m), lambda n, m: (n, 0, m)),  # g
                pl.BlockSpec((None, F_g, tile_m), lambda n, m: (n, 0, m)),  # x
                pl.BlockSpec((F_int, F_l), lambda n, m: (0, 0)),            # Wg
                pl.BlockSpec((F_int, F_g), lambda n, m: (0, 0)),            # Wx
                pl.BlockSpec((F_int, 1), lambda n, m: (0, 0)),              # bg+bx
                pl.BlockSpec((F_int, 1), lambda n, m: (0, 0)),              # Wpsi
                pl.BlockSpec(memory_space=pltpu.MemorySpace.SMEM),          # bpsi
            ],
            out_specs=pl.BlockSpec((None, F_g, tile_m), lambda n, m: (n, 0, m)),
        ),
        compiler_params=pltpu.CompilerParams(
            dimension_semantics=("parallel", "parallel"),
            vmem_limit_bytes=vmem_limit),
    )(g3, x3, wg_m, wx_m, bgx, wpsi_col, bpsi)

    if HW_pad != HW:
        out3 = out3[..., :HW]
    return out3.reshape(N, F_g, H, W)          # already NCHW; no transpose


# --------------------------------------------------------------------------
# Pure-JAX reference (eval-mode BN), NCHW
# --------------------------------------------------------------------------
def attention_block_ref(g, x, params, *, eps=1e-5):
    def conv_bn(inp, w_conv, b_conv, gamma, beta, mean, var):
        w_mat = w_conv[:, :, 0, 0]                              # (Cout, Cin)
        y = jnp.einsum("nchw,oc->nohw", inp, w_mat) + b_conv[None, :, None, None]
        scale = gamma / jnp.sqrt(var + eps)
        return (y - mean[None, :, None, None]) * scale[None, :, None, None] \
               + beta[None, :, None, None]

    g1 = conv_bn(g, params["wg"], params["bg"], params["g_gamma"],
                 params["g_beta"], params["g_mean"], params["g_var"])
    x1 = conv_bn(x, params["wx"], params["bx"], params["x_gamma"],
                 params["x_beta"], params["x_mean"], params["x_var"])
    p = jnp.maximum(g1 + x1, 0.0)
    psi = jax.nn.sigmoid(conv_bn(p, params["wpsi"], params["bpsi"],
                                 params["p_gamma"], params["p_beta"],
                                 params["p_mean"], params["p_var"]))
    return x * psi


def make_params(key, F_g, F_l, F_int):
    ks = jax.random.split(key, 6)
    return {
        # Conv weights, PyTorch layout (C_out, C_in, 1, 1)
        "wg":   0.1 * jax.random.normal(ks[0], (F_int, F_l, 1, 1), jnp.float32),
        "bg":   0.1 * jax.random.normal(ks[1], (F_int,), jnp.float32),
        "wx":   0.1 * jax.random.normal(ks[2], (F_int, F_g, 1, 1), jnp.float32),
        "bx":   0.1 * jax.random.normal(ks[3], (F_int,), jnp.float32),
        "wpsi": 0.1 * jax.random.normal(ks[4], (1, F_int, 1, 1), jnp.float32),
        "bpsi": 0.1 * jax.random.normal(ks[5], (1,), jnp.float32),
        # BatchNorm params / running stats (eval mode)
        "g_gamma": jnp.linspace(0.9, 1.1, F_int, dtype=jnp.float32),
        "g_beta":  jnp.linspace(-0.1, 0.1, F_int, dtype=jnp.float32),
        "g_mean":  jnp.linspace(-0.05, 0.05, F_int, dtype=jnp.float32),
        "g_var":   jnp.linspace(0.8, 1.2, F_int, dtype=jnp.float32),
        "x_gamma": jnp.linspace(1.1, 0.9, F_int, dtype=jnp.float32),
        "x_beta":  jnp.linspace(0.1, -0.1, F_int, dtype=jnp.float32),
        "x_mean":  jnp.linspace(0.05, -0.05, F_int, dtype=jnp.float32),
        "x_var":   jnp.linspace(1.2, 0.8, F_int, dtype=jnp.float32),
        "p_gamma": jnp.array([1.05], jnp.float32),
        "p_beta":  jnp.array([0.02], jnp.float32),
        "p_mean":  jnp.array([0.01], jnp.float32),
        "p_var":   jnp.array([0.95], jnp.float32),
    }


if __name__ == "__main__":
    # Small shapes: F_g = F_l = 4 channels, F_int = 8, batch 2, 16x16 spatial.
    N, F_g, F_l, F_int, H, W = 2, 4, 4, 8, 16, 16

    key = jax.random.PRNGKey(0)
    kg, kx, kp = jax.random.split(key, 3)
    g = jax.random.normal(kg, (N, F_l, H, W), jnp.float32)   # input to W_g
    x = jax.random.normal(kx, (N, F_g, H, W), jnp.float32)   # input to W_x
    params = make_params(kp, F_g, F_l, F_int)

    out = attention_block_pallas(g, x, params)
    out = jax.block_until_ready(out)

    ref = attention_block_ref(g, x, params)
    assert out.shape == (N, F_g, H, W)
    err = float(jnp.max(jnp.abs(out - ref)))
    assert jnp.allclose(out, ref, atol=1e-5, rtol=1e-5), f"max err {err}"

    print("KERNEL_OK")
</pallas_src>

<mosaic_0001>
module attributes {stable_mosaic.version = 11 : i64} {
  func.func @_att_kernel(%arg0: i32, %arg1: i32, %arg2: memref<1x4x256xf32, #tpu.memory_space<vmem>>, %arg3: memref<1x4x256xf32, #tpu.memory_space<vmem>>, %arg4: memref<8x4xf32, #tpu.memory_space<vmem>>, %arg5: memref<8x4xf32, #tpu.memory_space<vmem>>, %arg6: memref<8x1xf32, #tpu.memory_space<vmem>>, %arg7: memref<8x1xf32, #tpu.memory_space<vmem>>, %arg8: memref<1xf32, #tpu.memory_space<smem>>, %arg9: memref<1x4x256xf32, #tpu.memory_space<vmem>>) attributes {dimension_semantics = [#tpu.dimension_semantics<parallel>, #tpu.dimension_semantics<parallel>], iteration_bounds = array<i64: 2, 1>, scalar_prefetch = 0 : i64, scratch_operands = 0 : i64, tpu.core_type = #tpu.core_type<tc>, window_params = [{transform_indices = @transform_0, window_bounds = array<i64: 1, 4, 256>}, {transform_indices = @transform_1, window_bounds = array<i64: 1, 4, 256>}, {pipeline_mode = #tpu.pipeline_mode<synchronous>, transform_indices = @transform_2, window_bounds = array<i64: 8, 4>}, {pipeline_mode = #tpu.pipeline_mode<synchronous>, transform_indices = @transform_3, window_bounds = array<i64: 8, 4>}, {pipeline_mode = #tpu.pipeline_mode<synchronous>, transform_indices = @transform_4, window_bounds = array<i64: 8, 1>}, {pipeline_mode = #tpu.pipeline_mode<synchronous>, transform_indices = @transform_5, window_bounds = array<i64: 8, 1>}, {transform_indices = @transform_6, window_bounds = array<i64: 1>}, {transform_indices = @transform_7, window_bounds = array<i64: 1, 4, 256>}]} {
    %c0 = arith.constant 0 : index
    %c0_0 = arith.constant 0 : index
    %c0_1 = arith.constant 0 : index
    %0 = vector.load %arg3[%c0, %c0_0, %c0_1] : memref<1x4x256xf32, #tpu.memory_space<vmem>>, vector<1x4x256xf32>
    %1 = vector.shape_cast %0 : vector<1x4x256xf32> to vector<4x256xf32>
    %c0_2 = arith.constant 0 : index
    %c0_3 = arith.constant 0 : index
    %2 = vector.load %arg4[%c0_2, %c0_3] : memref<8x4xf32, #tpu.memory_space<vmem>>, vector<8x4xf32>
    %c0_4 = arith.constant 0 : index
    %c0_5 = arith.constant 0 : index
    %c0_6 = arith.constant 0 : index
    %3 = vector.load %arg2[%c0_4, %c0_5, %c0_6] : memref<1x4x256xf32, #tpu.memory_space<vmem>>, vector<1x4x256xf32>
    %4 = vector.shape_cast %3 : vector<1x4x256xf32> to vector<4x256xf32>
    %cst = arith.constant dense<0.000000e+00> : vector<8x256xf32>
    %5 = tpu.matmul %2, %4, %cst {dimension_numbers = #tpu.dot_dimension_numbers<[1], [0], [0], [1], [0, 0, 1, 1], [], []>} : vector<8x4xf32>, vector<4x256xf32>, vector<8x256xf32> -> vector<8x256xf32>
    %c0_7 = arith.constant 0 : index
    %c0_8 = arith.constant 0 : index
    %6 = vector.load %arg5[%c0_7, %c0_8] : memref<8x4xf32, #tpu.memory_space<vmem>>, vector<8x4xf32>
    %cst_9 = arith.constant dense<0.000000e+00> : vector<8x256xf32>
    %7 = tpu.matmul %6, %1, %cst_9 {dimension_numbers = #tpu.dot_dimension_numbers<[1], [0], [0], [1], [0, 0, 1, 1], [], []>} : vector<8x4xf32>, vector<4x256xf32>, vector<8x256xf32> -> vector<8x256xf32>
    %8 = arith.addf %5, %7 : vector<8x256xf32>
    %c0_10 = arith.constant 0 : index
    %c0_11 = arith.constant 0 : index
    %9 = vector.load %arg6[%c0_10, %c0_11] : memref<8x1xf32, #tpu.memory_space<vmem>>, vector<8x1xf32>
    %10 = vector.broadcast %9 : vector<8x1xf32> to vector<8x256xf32>
    %11 = arith.addf %8, %10 : vector<8x256xf32>
    %cst_12 = arith.constant 0.000000e+00 : f32
    %12 = vector.broadcast %cst_12 : f32 to vector<8x256xf32>
    %13 = arith.maximumf %11, %12 : vector<8x256xf32>
    %c0_13 = arith.constant 0 : index
    %c0_14 = arith.constant 0 : index
    %14 = vector.load %arg7[%c0_13, %c0_14] : memref<8x1xf32, #tpu.memory_space<vmem>>, vector<8x1xf32>
    %15 = vector.broadcast %14 : vector<8x1xf32> to vector<8x256xf32>
    %16 = arith.mulf %13, %15 : vector<8x256xf32>
    %cst_15 = arith.constant dense<0.000000e+00> : vector<256xf32>
    %17 = vector.multi_reduction <add>, %16, %cst_15 [0] : vector<8x256xf32> to vector<256xf32>
    %18 = vector.shape_cast %17 : vector<256xf32> to vector<1x256xf32>
    %c0_16 = arith.constant 0 : index
    %19 = memref.load %arg8[%c0_16] : memref<1xf32, #tpu.memory_space<smem>>
    %20 = vector.broadcast %19 : f32 to vector<1x256xf32>
    %21 = arith.addf %18, %20 : vector<1x256xf32>
    %22 = arith.negf %21 : vector<1x256xf32>
    %23 = math.exp %22 : vector<1x256xf32>
    %cst_17 = arith.constant 1.000000e+00 : f32
    %24 = vector.broadcast %cst_17 : f32 to vector<1x256xf32>
    %25 = arith.addf %24, %23 : vector<1x256xf32>
    %26 = arith.divf %24, %25 : vector<1x256xf32>
    %27 = vector.broadcast %26 : vector<1x256xf32> to vector<4x256xf32>
    %28 = arith.mulf %1, %27 : vector<4x256xf32>
    %c0_18 = arith.constant 0 : index
    %c0_19 = arith.constant 0 : index
    %c0_20 = arith.constant 0 : index
    %29 = vector.load %arg9[%c0_18, %c0_19, %c0_20] : memref<1x4x256xf32, #tpu.memory_space<vmem>>, vector<1x4x256xf32>
    %30 = vector.shape_cast %29 : vector<1x4x256xf32> to vector<4x256xf32>
    %31 = vector.shape_cast %28 : vector<4x256xf32> to vector<1x4x256xf32>
    tpu.vector_store %arg9[%c0_18, %c0_19, %c0_20], %31 {strides = array<i32>} : memref<1x4x256xf32, #tpu.memory_space<vmem>>, vector<1x4x256xf32>,
    return
  }
  func.func @transform_0(%arg0: i32, %arg1: i32) -> (i32, i32, i32) {
    %c0_i32 = arith.constant 0 : i32
    %c0_i32_0 = arith.constant 0 : i32
    return %arg0, %c0_i32, %arg1 : i32, i32, i32
  }
  func.func @transform_1(%arg0: i32, %arg1: i32) -> (i32, i32, i32) {
    %c0_i32 = arith.constant 0 : i32
    %c0_i32_0 = arith.constant 0 : i32
    return %arg0, %c0_i32, %arg1 : i32, i32, i32
  }
  func.func @transform_2(%arg0: i32, %arg1: i32) -> (i32, i32) {
    %c0_i32 = arith.constant 0 : i32
    %c0_i32_0 = arith.constant 0 : i32
    %c0_i32_1 = arith.constant 0 : i32
    return %c0_i32, %c0_i32_0 : i32, i32
  }
  func.func @transform_3(%arg0: i32, %arg1: i32) -> (i32, i32) {
    %c0_i32 = arith.constant 0 : i32
    %c0_i32_0 = arith.constant 0 : i32
    %c0_i32_1 = arith.constant 0 : i32
    return %c0_i32, %c0_i32_0 : i32, i32
  }
  func.func @transform_4(%arg0: i32, %arg1: i32) -> (i32, i32) {
    %c0_i32 = arith.constant 0 : i32
    %c0_i32_0 = arith.constant 0 : i32
    %c0_i32_1 = arith.constant 0 : i32
    return %c0_i32, %c0_i32_0 : i32, i32
  }
  func.func @transform_5(%arg0: i32, %arg1: i32) -> (i32, i32) {
    %c0_i32 = arith.constant 0 : i32
    %c0_i32_0 = arith.constant 0 : i32
    %c0_i32_1 = arith.constant 0 : i32
    return %c0_i32, %c0_i32_0 : i32, i32
  }
  func.func @transform_6(%arg0: i32, %arg1: i32) -> i32 {
    %c0_i32 = arith.constant 0 : i32
    %c0_i32_0 = arith.constant 0 : i32
    return %c0_i32 : i32
  }
  func.func @transform_7(%arg0: i32, %arg1: i32) -> (i32, i32, i32) {
    %c0_i32 = arith.constant 0 : i32
    %c0_i32_0 = arith.constant 0 : i32
    return %arg0, %c0_i32, %arg1 : i32, i32, i32
  }
}

</mosaic_0001>

<bundles_post_ra>
// kernel: tpu_custom_call.1
= control target key start
LH: loop header
LB: loop body
LE: loop exit
PB: predicated region body
PF: predicated region fallthrough
CT: control target
= control target key end

     0   :  { %s1078_s0 = inlined_call_operand.vmem [shape: f32[2,4,256], index: 0, kind: input, shape index: {}]   ;;  %s1079_s1 = inlined_call_operand.hbm [shape: f32[2,4,256], index: 1, kind: input, shape index: {}]   ;;  %s1080_s2 = inlined_call_operand.vmem [shape: f32[8,4], index: 2, kind: input, shape index: {}]   ;;  %s1081_s3 = inlined_call_operand.vmem [shape: f32[8,4], index: 3, kind: input, shape index: {}]   ;;  %s1082_s4 = inlined_call_operand.vmem [shape: f32[8,1], index: 4, kind: input, shape index: {}]   ;;  %s1083_s5 = inlined_call_operand.vmem [shape: f32[8,1], index: 5, kind: input, shape index: {}]   ;;  %s1084_s6 = inlined_call_operand.<no memory space> [shape: f32[1], index: 6, kind: input, shape index: {}]   ;;  %s1085_s7 = inlined_call_operand.hbm [shape: f32[2,4,256], index: 7, kind: output, shape index: {}]  }
   0x1   :  { %12 = sst [smem:[#allocation2]] %s1084_s6 }
   0x2   :  { %13 = vsyncpa [#allocation4], 0 }
   0x3   :  { %15 = vsyncpa [#allocation4 + $0x1], 0 }
   0x4   :  { %16 = vsyncpa [#allocation5], 0 }
   0x5   :  { %18 = vsyncpa [#allocation5 + $0x1], 0  ;;  %s922_s26 = smov 0   ;;  %s924_s27 = smov 0  }
   0x6   :  { %s926_s28 = smov 0   ;;  %s928_s29 = smov 0  }
   0x7   :  { %s930_s30 = smov 0   ;;  %s932_s8 = smov 0  }
   0x8 LB: > { %s662_s6 = sadd.s32 4294967295, %s876_s8   ;;  %s663_s9 = sadd.s32 4294967294, %s876_s8   ;;  %s876_s8 = sphi %s932_s8, %s24_s8   ;;  %s872_s30 = sphi %s930_s30, %s1096_s30   ;;  %s868_s29 = sphi %s928_s29, %s1095_s29   ;;  %s864_s28 = sphi %s926_s28, %s1094_s28   ;;  %s860_s27 = sphi %s924_s27, %s1093_s27   ;;  %s856_s26 = sphi %s922_s26, %s1092_s26  }
   0x9   : > { %s36_s10 = sadd.s32 1, %s872_s30  ;;  %s73_s11 = sadd.s32 1, %s864_s28 }
   0xa   : > { %p38_p0 = scmp.ge.s32.totalorder %s36_s10, 2  ;;  %p80_p1 = scmp.ne.s32.totalorder %s864_s28, %s860_s27 }
   0xb   : > { %p81_p2 = scmp.eq.s32.totalorder %s876_s8, 0  ;;  %p86_p3 = scmp.ne.s32.totalorder %s860_s27, %s856_s26 }
   0xc   : > { %s1098_s10 = smov (%p38_p0, %s36_s10), 0  ;;  %p87_p5 = scmp.eq.s32.totalorder %s662_s6, 0 }
   0xd   : > { %p963_p4 = por %p81_p2, %p80_p1  ;;  %s68_s13 = ssub.s32 %s872_s30, %s1098_s10 }
   0xe   : > { %p217_p6 = scmp.eq.s32.totalorder %s662_s6, 1  ;;  %p71_p7 = scmp.eq.s32.totalorder %s68_s13, 0 }
   0xf   : > { %p969_p8 = por %p87_p5, %p86_p3  ;;  %p223_p10 = scmp.eq.s32.totalorder %s663_s9, 1 }
  0x10   : > { %p973_p9 = por %p217_p6, %p80_p1  ;;  %p665_p12 = scmp.ge.s32.totalorder %s876_s8, 2 }
  0x11   : > { %s978_s16 = scalar_select %p71_p7, %s864_s28, %s73_s11  }
  0x12   : > { %p980_p11 = por %p223_p10, %p86_p3  ;;  %p704_p13 = scmp.lt.s32.totalorder %s876_s8, 2 }
  0x13   : > { %s271_s18 = sand.u32 1, %s864_s28   ;;  %s689_s20 = sshll.u32 %s872_s30, 3 }
  0x14   : > { %s666_s19 = sshll.u32 %s271_s18, 3  ;;  %s282_s23 = scalar_lea.hbm %s1079_s1, %s689_s20 }
  0x15   : > { %s275_s24 = scalar_lea.vmem [#allocation3], %s666_s19  ;;  %s284_s6 = sshll.u32 %s282_s23, 4  ;;  %s285_s6 = int_to_ptr.hbm [resolvable:$true] %s284_s6 }
  0x16   : > { %s286_s25 = sshll.u32 %s275_s24, 4  ;;  %p697_p0 = pnand %p704_p13, %p963_p4  ;;  %s287_s25 = int_to_ptr.vmem [resolvable:$true] %s286_s25 }
  0x17   : > { %p669_p1 = scmp.ge.s32.totalorder %s876_s8, 1  ;;  %p291_p2 = scmp.lt.s32.totalorder %s876_s8, 3 }
  0x18   : > { %s272_s9 = scalar_lea.sflag [#allocation4], %s271_s18 }
  0x19   : > { %699 = dma.hbm_to_vmem [thread:$0]  (!%p697_p0), %s285_s6, 128, %s287_s25, %s272_s9  }
  0x1a   : > { %p292_p3 = pnand %p669_p1, %p291_p2 }
  0x1b   : > { %s996_s11 = sand.u32 (!%p292_p3), 1, %s860_s27  }
  0x1c   : > { %295 = sbr.rel (%p292_p3) target bundleno = 243 (0xf3), region = 48  ;;  %s670_s13 = sshll.u32 (!%p292_p3), %s996_s11, 3 }
  0x1d   : > { %s298_s19 = scalar_lea.sflag (!%p292_p3), [#allocation4], %s996_s11  ;;  %s301_s20 = scalar_lea.vmem (!%p292_p3), [#allocation3], %s670_s13 }
  0x21   : > { %847 = dma.done.wait (%p969_p8), %s298_s19, 128  }
  0x22   : > { %849 = vsyncadd (%p969_p8), %s298_s19, 4294967168  ;;  %p343_p4 = scmp.lt.s32.totalorder %s868_s29, 1  ;;  %v878_v0 = vmov 0   ;;  %v1008_v1 = vld [vmem:[%s301_s20] sm:$0xff]  ;;  %v462_v2 = vld [vmem:[%s1082_s4] sm:$0xff]  ;;  %vm366_vm0 = vcmask 1043456  }
  0x23   : > { %755 = vset.pattern.permute.xlu0 %v878_v0  ;;  %359 = vst [vmem:[#allocation1] ss:$2 sm:$0xff] %v1008_v1  ;;  %v357_v4 = vld [vmem:[%s1081_s3] sm:$0xff]  ;;  %vm362_vm1 = vcmask 31744   ;;  %s691_s21 = sshll.u32 %s868_s29, 3  ;;  %s542_s6 = scalar_lea.sflag [#allocation5], %s996_s11 }
  0x24   : > { %s344_s12 = scalar_select %p343_p4, %s868_s29, 1  ;;  %465 = vperm.xlu0 %755, %v462_v2   ;;  %v472_v5 = vld [vmem:[%s1083_s5] sm:$0xff] }
  0x25   : > { %v355_v8 = vld [vmem:[%s1080_s2] sm:$0xff]  ;;  %s555_s24 = scalar_lea.hbm %s1085_s7, %s691_s21  ;;  %s341_s29 = scalar_lea.vmem [#allocation6], %s670_s13 }
  0x26   : > { %s690_s18 = sshll.u32 %s344_s12, 3  ;;  %s559_s25 = sshll.u32 %s555_s24, 4  ;;  %s560_s25 = int_to_ptr.hbm [resolvable:$true] %s559_s25 }
  0x27   : > { %s350_s14 = scalar_lea.vmem %s1078_s0, %s690_s18  ;;  %s492_s18 = sld [smem:[#allocation2]] }
  0x28   : > { %v356_v3 = vld [vmem:[%s350_s14] sm:$0xff]  ;;  %s557_s14 = sshll.u32 %s341_s29, 4  ;;  %s808_s9 = sshra.s32 %s560_s25, 4  ;;  %s558_s14 = int_to_ptr.vmem [resolvable:$true] %s557_s14  ;;  %s809_s9 = int_to_ptr.hbm [resolvable:$true] %s808_s9 }
  0x29   : > { %s810_s19 = scalar_lea.hbm %s809_s9, 8  ;;  %s814_s12 = scalar_lea.hbm %s1085_s7, 16 }
  0x2a   : > { %v360_v6 = vld.sshfl [vmem:[#allocation1] sm:$0xff pattern:$0x75316420]  ;;  %v361_v7 = vld.sshfl [vmem:[#allocation1 + $0x8] sm:$0xff pattern:$0x75316420]  ;;  %p811_p5 = scmp.ne.s32.totalorder %s809_s9, %s810_s19  ;;  %p815_p8 = scmp.lt.s32.totalorder %s809_s9, %s1085_s7 }
  0x2b   : > { %412 = vst [vmem:[#allocation1] ss:$2 sm:$0xff] %v356_v3  ;;  %674 = vmatpush.msk.msra.mxu0 %vm366_vm0, %v360_v6  ;;  %676 = vmatpush.msk.msra.mxu1 %vm366_vm0, %v361_v7  ;;  %p816_p10 = scmp.lt.s32.totalorder %s814_s12, %s810_s19 }
  0x2c   : > { %675 = vmatmul.msk.f32.vlgmr.msra.gmra.mxu0 %vm362_vm1, %v357_v4  ;;  %677 = vmatmul.msk.f32.vlgmr.msra.gmra.mxu1 %vm362_vm1, %v357_v4  ;;  %p812_p6 = pnand %p811_p5, %p973_p9 }
  0x2d   : > { %475 = vperm.xlu0 %755, %v472_v5   ;;  %v493_v35 = vstv %s492_s18  ;;  %p817_p13 = por %p816_p10, %p815_p8 }
  0x2e   : > { %p813_p7 = pneg %p812_p6 }
  0x30   : > { %p818_p0 = pnand %p817_p13, %p813_p7 }
  0x32   : > { %v413_v9 = vld.sshfl [vmem:[#allocation1] sm:$0xff pattern:$0x75316420]  ;;  %v414_v10 = vld.sshfl [vmem:[#allocation1 + $0x8] sm:$0xff pattern:$0x75316420] }
  0x33   : > { %678 = vmatpush.msk.msra.mxu2 %vm366_vm0, %v413_v9  ;;  %680 = vmatpush.msk.msra.mxu3 %vm366_vm0, %v414_v10 }
  0x34   : > { %679 = vmatmul.msk.f32.vlgmr.msra.gmra.mxu2 %vm362_vm1, %v355_v8  ;;  %681 = vmatmul.msk.f32.vlgmr.msra.gmra.mxu3 %vm362_vm1, %v355_v8 }
  0x96   : > { %v466_v11 = vpop.permute.xlu0 %465 }
  0x9f   : > { %v476_v22 = vpop.permute.xlu0 %475 }
  0xa9   : > { %v388_v12 = vpop.f32.mrf.mxu0  ;;  %v408_v13 = vpop.f32.mrf.mxu1 }
  0xb7   : > { %v439_v14 = vpop.f32.mrf.mxu2  ;;  %v459_v15 = vpop.f32.mrf.mxu3 }
  0xb8   : > { %v440_v16 = vadd.f32 %v439_v14, %v388_v12  ;;  %v460_v17 = vadd.f32 %v459_v15, %v408_v13 }
  0xba   : > { %v468_v18 = vadd.f32 %v466_v11, %v440_v16  ;;  %v469_v19 = vadd.f32 %v466_v11, %v460_v17 }
  0xbc   : > { %v470_v20 = vmax.f32 %v468_v18, 0.0  ;;  %v471_v21 = vmax.f32 %v469_v19, 0.0 }
  0xbe   : > { %v478_v23 = vmul.f32 %v476_v22, %v470_v20  ;;  %v479_v24 = vmul.f32 %v476_v22, %v471_v21 }
  0xc0   : > { %v480_v25 = vrot.slane %v478_v23, 4  ;;  %v486_v26 = vrot.slane %v479_v24, 4 }
  0xc2   : > { %v481_v27 = vadd.f32 %v480_v25, %v478_v23  ;;  %v487_v28 = vadd.f32 %v486_v26, %v479_v24 }
  0xc4   : > { %v482_v29 = vrot.slane %v481_v27, 2  ;;  %v488_v30 = vrot.slane %v487_v28, 2 }
  0xc6   : > { %v483_v31 = vadd.f32 %v482_v29, %v481_v27  ;;  %v489_v32 = vadd.f32 %v488_v30, %v487_v28 }
  0xc8   : > { %v484_v33 = vrot.slane %v483_v31, 1  ;;  %v490_v34 = vrot.slane %v489_v32, 1 }
  0xca   : > { %v485_v36 = vadd.f32 %v484_v33, %v483_v31  ;;  %v491_v37 = vadd.f32 %v490_v34, %v489_v32 }
  0xcc   : > { %v494_v38 = vadd.f32 %v493_v35, %v485_v36  ;;  %v495_v39 = vadd.f32 %v493_v35, %v491_v37 }
  0xce   : > { %v682_v40 = vmul.f32 -1.442695, %v494_v38  ;;  %v683_v41 = vmul.f32 -1.442695, %v495_v39 }
  0xd0   : > { %756 = vpow2.f32 %v682_v40 }
  0xd1   : > { %758 = vpow2.f32 %v683_v41 }
  0xd6   : > { %v757_v42 = vpop.eup %756 }
  0xd7   : > { %v759_v43 = vpop.eup %758  ;;  %v502_v44 = vadd.f32 1.0, %v757_v42 }
  0xd8   : > { %v503_v45 = vadd.f32 1.0, %v759_v43 }
  0xd9   : > { %760 = vrcp.f32 %v502_v44  ;;  %vm509_vm4 = vweird.f32 %v502_v44  ;;  %v515_v57 = vand.u32 2147483648, %v502_v44  ;;  %v513_v59 = vand.u32 2147483647, %v502_v44 }
  0xda   : > { %762 = vrcp.f32 %v503_v45  ;;  %v530_v53 = vand.u32 2147483648, %v503_v45  ;;  %v528_v55 = vand.u32 2147483647, %v503_v45  ;;  %vm524_vm6 = vweird.f32 %v503_v45 }
  0xdb   : > { %v516_v0 = vor.u32 1.1754944e-38, %v515_v57  ;;  %vm514_vm9 = vcmp.eq.f32.partialorder %v513_v59, 8.507059e+37 }
  0xdc   : > { %v531_v61 = vor.u32 1.1754944e-38, %v530_v53  ;;  %vm529_vm8 = vcmp.eq.f32.partialorder %v528_v55, 8.507059e+37 }
  0xdf   : > { %v761_v46 = vpop.eup %760 }
  0xe0   : > { %v763_v47 = vpop.eup %762  ;;  %v505_v48 = vmul.f32 %v761_v46, %v502_v44  ;;  %vm510_vm2 = vweird.f32 %v761_v46 }
  0xe1   : > { %v520_v49 = vmul.f32 %v763_v47, %v503_v45  ;;  %vm525_vm3 = vweird.f32 %v763_v47  ;;  %vm1031_vm5 = vmor %vm509_vm4, %vm510_vm2 }
  0xe2   : > { %v506_v50 = vsub.f32 1.0, %v505_v48  ;;  %vm526_vm7 = vmor %vm524_vm6, %vm525_vm3 }
  0xe3   : > { %v521_v51 = vsub.f32 1.0, %v520_v49 }
  0xe4   : > { %v507_v52 = vmul.f32 %v761_v46, %v506_v50 }
  0xe5   : > { %v522_v54 = vmul.f32 %v763_v47, %v521_v51 }
  0xe6   : > { %v508_v56 = vadd.f32 %v761_v46, %v507_v52 }
  0xe7   : > { %v523_v60 = vadd.f32 %v763_v47, %v522_v54 }
  0xe8   : > { %v512_v62 = vsel %vm1031_vm5, %v761_v46, %v508_v56 }
  0xe9   : > { %v527_v63 = vsel %vm526_vm7, %v763_v47, %v523_v60  ;;  %v517_v4 = vsel %vm514_vm9, %v516_v0, %v512_v62 }
  0xea   : > { %v532_v2 = vsel %vm529_vm8, %v531_v61, %v527_v63 }
  0xeb   : > { %v536_v3 = vrot.slane %v532_v2, 4 }
  0xed   : > { %v537_v5 = vsel %vm366_vm0, %v517_v4, %v536_v3 }
  0xee   : > { %v539_v6 = vmul.f32 %v537_v5, %v1008_v1 }
  0xf0   : > { %540 = vst [vmem:[%s341_s29] sm:$0xff] %v539_v6 }
  0xf1   : > { %821 = shalt.err (!%p818_p0)
}
  0xf2   : > { %694 = dma.vmem_to_hbm [thread:$0]  (%p973_p9), %s558_s14, 128, %s560_s25, %s542_s6  }
  0xf3 PF: > { %s571_s11 = sand.u32 1, %s856_s26   ;;  %p701_p1 = pnand %p665_p12, %p980_p11 }
  0xf4   : > { %s572_s22 = scalar_lea.sflag [#allocation5], %s571_s11 }
  0xf5   : > { %p702_p2 = pneg %p701_p1 }
  0xf7   : > { %851 = dma.done.wait (%p702_p2), %s572_s22, 128  }
  0xf8   : > { %853 = vsyncadd (%p702_p2), %s572_s22, 4294967168  ;;  %s24_s8 = sadd.s32 1, %s876_s8   ;;  %s1092_s26 = smov %s860_s27 }
  0xf9   : > { %p21_p3 = scmp.ge.s32.totalorder %s24_s8, 4   ;;  %s1093_s27 = smov %s864_s28 }
  0xfa   : > { %s1094_s28 = smov %s978_s16  ;;  %s1095_s29 = smov %s872_s30 }
  0xfb   : > { %s1096_s30 = smov %s1098_s10  ;;  %23 = sbr.rel (!%p21_p3) target bundleno = 8 (0x8), region = 96 }
 0x100   :  { %578 = vsyncpa [#allocation4], 1 }
 0x101   :  { %580 = vsyncpa [#allocation4 + $0x1], 1 }
 0x102   :  { %581 = vsyncpa [#allocation5], 1 }
 0x103   :  { %583 = vsyncpa [#allocation5 + $0x1], 1 }

</bundles_post_ra>
